<compile_context>
chip_gen: v6e
topology: v6e:2x2x1
jax: 0.10.0
libtpu: 0.0.40
codegen_flags: <defaults>
</compile_context>

<pallas_src>
import functools

import jax
import jax.numpy as jnp
from jax.experimental import pallas as pl
from jax.experimental.pallas import tpu as pltpu

LANE = 128
SUBLANE = 8


def _rmsle_kernel(pred_ref, act_ref, out_ref, *,
                  rows, tile_rows, acc_rows, need_mask):
    """Accumulate partial sums of squared log-diffs into the resident out block.

    pred_ref/act_ref: (tile_rows, 128) tiles in VMEM (native dtype; cast here)
    out_ref:          (acc_rows, 128) f32 partial sums, resident across the grid
    """
    i = pl.program_id(0)

    @pl.when(i == 0)
    def _():
        out_ref[...] = jnp.zeros_like(out_ref)

    p = pred_ref[...].astype(jnp.float32)
    a = act_ref[...].astype(jnp.float32)

    # Single transcendental per element (exact for actual > -1, same singular
    # domain as the reference):  log1p(p) - log1p(a) == log1p((p - a) / (1 + a))
    d = jnp.log1p((p - a) / (a + 1.0))
    dd = d * d

    def fold(x):
        if acc_rows == SUBLANE:
            # Sublane-preserving partial reduce: pure full-vreg VPU adds,
            # no XLU sublane reduce, unmasked (8,128) accumulator store.
            return x.reshape(tile_rows // SUBLANE, SUBLANE, LANE).sum(axis=0)
        # Fallback for a single full-extent block whose row count isn't a
        # multiple of 8 (tiny inputs only).
        return jnp.sum(x, axis=0, keepdims=True)

    if need_mask:
        last = pl.num_programs(0) - 1

        @pl.when(i != last)
        def _():
            out_ref[...] += fold(dd)

        @pl.when(i == last)
        def _():
            # Only the ragged last tile pays for the row mask; (tile_rows, 1)
            # iota broadcasts along lanes for free.
            row0 = i * tile_rows
            local_row = jax.lax.broadcasted_iota(jnp.int32, (tile_rows, 1), 0)
            out_ref[...] += fold(jnp.where(row0 + local_row < rows, dd, 0.0))
    else:
        out_ref[...] += fold(dd)


def rmsle_loss(pred, actual, *, tile_rows=4096):
    assert pred.shape == actual.shape, "pred/actual must have identical shapes"
    n_elems = pred.size

    p_flat = jnp.ravel(pred)
    a_flat = jnp.ravel(actual)

    rows = n_elems // LANE
    n_main = rows * LANE

    # Ragged <128-element tail: tiny, summed in plain JAX. Avoids jnp.pad
    # materializing a full HBM copy of both inputs.
    if n_main != n_elems:
        tp = p_flat[n_main:].astype(jnp.float32)
        ta = a_flat[n_main:].astype(jnp.float32)
        tail_sum = jnp.sum(jnp.square(jnp.log1p(tp) - jnp.log1p(ta)))
    else:
        tail_sum = jnp.float32(0.0)

    if rows == 0:
        return jnp.sqrt(tail_sum / n_elems)

    p2 = p_flat[:n_main].reshape(rows, LANE)
    a2 = a_flat[:n_main].reshape(rows, LANE)

    # Row tile: largest streaming tile that amortizes per-step overhead.
    # Minimum second-minor tile depends on dtype packing:
    #   f32 -> 8 rows, bf16/f16 -> 16 rows, int8/fp8 -> 32 rows.
    itemsize = min(p2.dtype.itemsize, a2.dtype.itemsize)
    pack = SUBLANE * max(1, 4 // max(1, itemsize))
    if rows <= tile_rows:
        tr = rows                                      # single full-extent block
    else:
        tr = max(pack, (tile_rows // pack) * pack)

    steps = pl.cdiv(rows, tr)
    need_mask = (rows % tr) != 0
    acc_rows = SUBLANE if (tr % SUBLANE == 0) else 1

    kernel = functools.partial(
        _rmsle_kernel, rows=rows, tile_rows=tr,
        acc_rows=acc_rows, need_mask=need_mask)

    bytes_accessed = (n_main * (p2.dtype.itemsize + a2.dtype.itemsize)
                      + acc_rows * LANE * 4)

    partials = pl.pallas_call(
        kernel,
        out_shape=jax.ShapeDtypeStruct((acc_rows, LANE), jnp.float32),
        grid_spec=pltpu.PrefetchScalarGridSpec(
            num_scalar_prefetch=0,
            grid=(steps,),
            in_specs=[
                pl.BlockSpec((tr, LANE), lambda i: (i, 0)),
                pl.BlockSpec((tr, LANE), lambda i: (i, 0)),
            ],
            out_specs=pl.BlockSpec((acc_rows, LANE), lambda i: (0, 0)),
        ),
        compiler_params=pltpu.CompilerParams(
            dimension_semantics=("arbitrary",),
            # Headroom for 2 inputs x 2 pipeline buffers at tr=4096 plus the
            # kernel's elementwise f32 temporaries on every generation
            # (v5e default scoped limit is only 16 MiB).
            vmem_limit_bytes=48 * 1024 * 1024,
        ),
        cost_estimate=pl.CostEstimate(
            flops=5 * n_main,
            transcendentals=2 * n_main,
            bytes_accessed=bytes_accessed),
    )(p2, a2)

    # Final cross-lane/sublane reduce + mean + sqrt (tiny, done once).
    return jnp.sqrt((jnp.sum(partials) + tail_sum) / n_elems)


if __name__ == "__main__":
    key = jax.random.PRNGKey(0)
    k1, k2 = jax.random.split(key)
    # NCHW-shaped positive inputs (log requires pred+1 > 0, actual+1 > 0)
    shape = (2, 4, 16, 16)
    pred = jax.random.uniform(k1, shape, dtype=jnp.float32, minval=0.0, maxval=5.0)
    actual = jax.random.uniform(k2, shape, dtype=jnp.float32, minval=0.0, maxval=5.0)

    loss = jax.jit(rmsle_loss)(pred, actual)
    jax.block_until_ready(loss)

    # reference check (matches torch.sqrt(MSELoss(log(pred+1), log(actual+1))))
    ref = jnp.sqrt(jnp.mean((jnp.log1p(pred) - jnp.log1p(actual)) ** 2))
    assert jnp.allclose(loss, ref, rtol=1e-5, atol=1e-6), (loss, ref)

    print("KERNEL_OK")
</pallas_src>

<mosaic_0001>
module attributes {stable_mosaic.version = 11 : i64} {
  func.func @_rmsle_kernel(%arg0: i32, %arg1: memref<16x128xf32, #tpu.memory_space<vmem>>, %arg2: memref<16x128xf32, #tpu.memory_space<vmem>>, %arg3: memref<8x128xf32, #tpu.memory_space<vmem>>) attributes {dimension_semantics = [#tpu.dimension_semantics<arbitrary>], iteration_bounds = array<i64: 1>, scalar_prefetch = 0 : i64, scratch_operands = 0 : i64, tpu.core_type = #tpu.core_type<tc>, window_params = [{transform_indices = @transform_0, window_bounds = array<i64: 16, 128>}, {transform_indices = @transform_1, window_bounds = array<i64: 16, 128>}, {pipeline_mode = #tpu.pipeline_mode<synchronous>, transform_indices = @transform_2, window_bounds = array<i64: 8, 128>}]} {
    %c0_i32 = arith.constant 0 : i32
    %0 = arith.cmpi eq, %arg0, %c0_i32 : i32
    %1 = arith.extui %0 : i1 to i32
    %c0_i32_0 = arith.constant 0 : i32
    %2 = arith.cmpi ne, %1, %c0_i32_0 : i32
    scf.if %2 {
      %cst_9 = arith.constant 0.000000e+00 : f32
      %16 = vector.broadcast %cst_9 : f32 to vector<8x128xf32>
      %c0_10 = arith.constant 0 : index
      %c0_11 = arith.constant 0 : index
      %17 = vector.load %arg3[%c0_10, %c0_11] : memref<8x128xf32, #tpu.memory_space<vmem>>, vector<8x128xf32>
      tpu.vector_store %arg3[%c0_10, %c0_11], %16 {strides = array<i32>} : memref<8x128xf32, #tpu.memory_space<vmem>>, vector<8x128xf32>,
    } else {
    }
    %c0 = arith.constant 0 : index
    %c0_1 = arith.constant 0 : index
    %3 = vector.load %arg1[%c0, %c0_1] : memref<16x128xf32, #tpu.memory_space<vmem>>, vector<16x128xf32>
    %c0_2 = arith.constant 0 : index
    %c0_3 = arith.constant 0 : index
    %4 = vector.load %arg2[%c0_2, %c0_3] : memref<16x128xf32, #tpu.memory_space<vmem>>, vector<16x128xf32>
    %5 = arith.subf %3, %4 : vector<16x128xf32>
    %cst = arith.constant 1.000000e+00 : f32
    %6 = vector.broadcast %cst : f32 to vector<16x128xf32>
    %7 = arith.addf %4, %6 : vector<16x128xf32>
    %8 = arith.divf %5, %7 : vector<16x128xf32>
    %9 = math.log1p %8 : vector<16x128xf32>
    %10 = arith.mulf %9, %9 : vector<16x128xf32>
    %c0_4 = arith.constant 0 : index
    %c0_5 = arith.constant 0 : index
    %11 = vector.load %arg3[%c0_4, %c0_5] : memref<8x128xf32, #tpu.memory_space<vmem>>, vector<8x128xf32>
    %12 = vector.shape_cast %10 : vector<16x128xf32> to vector<2x8x128xf32>
    %cst_6 = arith.constant dense<0.000000e+00> : vector<8x128xf32>
    %13 = vector.multi_reduction <add>, %12, %cst_6 [0] : vector<2x8x128xf32> to vector<8x128xf32>
    %14 = arith.addf %11, %13 : vector<8x128xf32>
    %c0_7 = arith.constant 0 : index
    %c0_8 = arith.constant 0 : index
    %15 = vector.load %arg3[%c0_7, %c0_8] : memref<8x128xf32, #tpu.memory_space<vmem>>, vector<8x128xf32>
    tpu.vector_store %arg3[%c0_7, %c0_8], %14 {strides = array<i32>} : memref<8x128xf32, #tpu.memory_space<vmem>>, vector<8x128xf32>,
    return
  }
  func.func @transform_0(%arg0: i32) -> (i32, i32) {
    %c0_i32 = arith.constant 0 : i32
    %c0_i32_0 = arith.constant 0 : i32
    return %arg0, %c0_i32 : i32, i32
  }
  func.func @transform_1(%arg0: i32) -> (i32, i32) {
    %c0_i32 = arith.constant 0 : i32
    %c0_i32_0 = arith.constant 0 : i32
    return %arg0, %c0_i32 : i32, i32
  }
  func.func @transform_2(%arg0: i32) -> (i32, i32) {
    %c0_i32 = arith.constant 0 : i32
    %c0_i32_0 = arith.constant 0 : i32
    %c0_i32_1 = arith.constant 0 : i32
    return %c0_i32, %c0_i32_0 : i32, i32
  }
}

</mosaic_0001>

<bundles_post_ra>
// kernel: rmsle_loss.1
= control target key start
LH: loop header
LB: loop body
LE: loop exit
PB: predicated region body
PF: predicated region fallthrough
CT: control target
= control target key end

     0   :  { %s95_s1 = inlined_call_operand.vmem [shape: f32[16,128], index: 1, kind: input, shape index: {}]   ;;  %s96_s0 = inlined_call_operand.vmem [shape: f32[16,128], index: 0, kind: input, shape index: {}]   ;;  %s97_s2 = inlined_call_operand.vmem [shape: f32[8,128], index: 2, kind: output, shape index: {}]  }
   0x1   :  { %v18_v0 = vld [vmem:[%s95_s1] sm:$0xff]  ;;  %v19_v1 = vld [vmem:[%s95_s1 + $0x8] sm:$0xff] }
   0x2   :  { %v22_v2 = vadd.f32 1.0, %v18_v0  ;;  %v23_v3 = vadd.f32 1.0, %v19_v1  ;;  %v16_v4 = vld [vmem:[%s96_s0] sm:$0xff]  ;;  %v17_v5 = vld [vmem:[%s96_s0 + $0x8] sm:$0xff] }
   0x3   :  { %v20_v6 = vsub.f32 %v16_v4, %v18_v0  ;;  %v21_v7 = vsub.f32 %v17_v5, %v19_v1 }
   0x4   :  { %57 = vrcp.f32 %v22_v2 }
   0x5   :  { %59 = vrcp.f32 %v23_v3 }
  0x11   :  { %v58_v8 = vpop.eup %57 }
  0x12   :  { %v60_v9 = vpop.eup %59  ;;  %v25_v10 = vmul.f32 %v58_v8, %v20_v6 }
  0x13   :  { %v27_v11 = vmul.f32 %v60_v9, %v21_v7 }
  0x14   :  { %v28_v12 = vadd.f32 1.0, %v25_v10  ;;  %v31_v14 = vmul.f32 -0.5, %v25_v10  ;;  %v34_v17 = vand.u32 2147483647, %v25_v10 }
  0x15   :  { %v37_v13 = vadd.f32 1.0, %v27_v11  ;;  %v40_v15 = vmul.f32 -0.5, %v27_v11  ;;  %v43_v19 = vand.u32 2147483647, %v27_v11 }
  0x16   :  { %61 = vlog2.f32 %v28_v12  ;;  %v32_v16 = vadd.f32 1.0, %v31_v14  ;;  %vm35_vm0 = vcmp.lt.f32.partialorder %v34_v17, 0.0004427343 }
  0x17   :  { %63 = vlog2.f32 %v37_v13  ;;  %v41_v18 = vadd.f32 1.0, %v40_v15  ;;  %vm44_vm1 = vcmp.lt.f32.partialorder %v43_v19, 0.0004427343 }
  0x18   :  { %v33_v20 = vmul.f32 %v32_v16, %v25_v10 }
  0x19   :  { %v42_v22 = vmul.f32 %v41_v18, %v27_v11 }
  0x23   :  { %v62_v21 = vpop.eup %61 }
  0x24   :  { %v64_v23 = vpop.eup %63  ;;  %v30_v24 = vmul.f32 0.6931472, %v62_v21 }
  0x25   :  { %v39_v25 = vmul.f32 0.6931472, %v64_v23 }
  0x26   :  { %v36_v26 = vsel %vm35_vm0, %v33_v20, %v30_v24 }
  0x27   :  { %v45_v27 = vsel %vm44_vm1, %v42_v22, %v39_v25  ;;  %v46_v28 = vmul.f32 %v36_v26, %v36_v26 }
  0x28   :  { %v47_v29 = vmul.f32 %v45_v27, %v45_v27 }
  0x2a   :  { %v49_v30 = vadd.f32 %v47_v29, %v46_v28 }
  0x2c   :  { %51 = vst [vmem:[%s97_s2] sm:$0xff] %v49_v30 }

</bundles_post_ra>
